<compile_context>
chip_gen: v6e
topology: v6e:2x2x1
jax: 0.10.0
libtpu: 0.0.40
codegen_flags: <defaults>
</compile_context>

<pallas_src>
import functools

import jax
import jax.numpy as jnp
from jax.experimental import pallas as pl
from jax.experimental.pallas import tpu as pltpu


def _conv2d_kernel(w_ref, b_ref, x_hbm, o_ref, buf, sem, *,
                   H, W, OW, TM, NB, SLAB, OVER, KH, KW):
    """One TM-row block of the valid cross-correlation.

    w_ref : (KH*KW,)        SMEM  flattened weights (scalar reads)
    b_ref : (1,)            SMEM  bias
    x_hbm : (H, W)          HBM   full input (memory_space=pl.ANY, manual DMA)
    o_ref : (TM, OW)        VMEM  output block (Pallas-pipelined write-back)
    buf   : (2, SLAB+OVER, W) VMEM double-buffered input slab
    sem   : (2,)            DMA semaphores
    """
    i = pl.program_id(0)

    def slab_copy(row0, slot):
        # DMA input rows [row0, row0 + SLAB) into slab buffer `slot`.
        return pltpu.make_async_copy(
            x_hbm.at[pl.ds(row0, SLAB), :],
            buf.at[slot, pl.ds(0, SLAB), :],
            sem.at[slot],
        )

    def slab_start(block):
        # Clamp so the DMA never reads past row H.  Only clamps on a partial last
        # block; the wrapper guarantees H >= SLAB.
        return jnp.minimum(block * TM, H - SLAB)

    # ---- prime the pipeline --------------------------------------------------
    @pl.when(i == 0)
    def _prime():
        if OVER > 0:
            # Rows [SLAB, SLAB+OVER) are only ever read for output rows >= OH
            # (masked by Pallas on store); zero them once so nothing reads junk.
            z = jnp.zeros((OVER, W), dtype=buf.dtype)
            buf[0, SLAB:, :] = z
            buf[1, SLAB:, :] = z
        slab_copy(slab_start(i), 0).start()

    slot = i % 2
    slab_copy(0, slot).wait()          # wait for this block's slab

    if NB > 1:
        @pl.when(i < NB - 1)
        def _prefetch():               # overlap the next block's input DMA with compute
            slab_copy(slab_start(i + 1), 1 - slot).start()

    # ---- compute -------------------------------------------------------------
    # off != 0 only on a clamped (partial) last block.
    off = i * TM - slab_start(i)

    acc = None
    for di in range(KH):
        # Row shift via a sublane-offset load (cheap vld; keeps the XLU free for
        # the column rolls below).
        strip = buf[slot, pl.ds(off + di, TM), :].astype(jnp.float32)
        for dj in range(KW):
            # Column shift on the XLU; wrapped lanes land only at columns >= OW,
            # which are never stored.
            win = strip if dj == 0 else pltpu.roll(strip, shift=W - dj, axis=1)
            tap = win * w_ref[di * KW + dj]
            if acc is None:
                acc = tap + b_ref[0]   # fused first-tap + bias accumulator init
            else:
                acc = acc + tap

    o_ref[...] = acc[:, :OW].astype(o_ref.dtype)


def conv2d(x, weight, bias, *, tile_rows=None, vmem_budget_bytes=36 * 1024 * 1024):
    """Equivalent of Conv2D.forward: corr2d(x, weight) + bias on a 2-D x."""
    H, W = x.shape
    KH, KW = weight.shape
    OH, OW = H - KH + 1, W - KW + 1

    # Output-row tile: as large as a conservative VMEM budget allows (safe for v7x's
    # 64 MiB VMEM), capped at 512 rows; multiple of 8 whenever the grid has >1 block.
    if tile_rows is None:
        per_row_bytes = 7 * W * 4      # 2-slot input slab + 2 output bufs + temporaries
        tile_rows = max(8, min(512, (vmem_budget_bytes // per_row_bytes) // 8 * 8))
    TM = min(int(tile_rows), OH)
    if TM < OH:
        TM = max(8, (TM // 8) * 8)
    NB = int(pl.cdiv(OH, TM))
    SLAB = TM + KH - 1                 # input rows per block (KH-1 row halo)
    OVER = NB * TM - OH                # row padding of the (possibly partial) last block
    assert H >= SLAB and 0 <= OVER < TM

    kernel = functools.partial(
        _conv2d_kernel,
        H=H, W=W, OW=OW, TM=TM, NB=NB, SLAB=SLAB, OVER=OVER, KH=KH, KW=KW)

    return pl.pallas_call(
        kernel,
        out_shape=jax.ShapeDtypeStruct((OH, OW), x.dtype),
        grid_spec=pltpu.PrefetchScalarGridSpec(
            num_scalar_prefetch=0,
            grid=(NB,),
            in_specs=[
                pl.BlockSpec(memory_space=pltpu.MemorySpace.SMEM),   # weights (flattened)
                pl.BlockSpec(memory_space=pltpu.MemorySpace.SMEM),   # bias
                pl.BlockSpec(memory_space=pl.ANY),                   # x stays in HBM
            ],
            out_specs=pl.BlockSpec((TM, OW), lambda i: (i, 0)),
            scratch_shapes=[
                pltpu.VMEM((2, SLAB + OVER, W), x.dtype),
                pltpu.SemaphoreType.DMA((2,)),
            ],
        ),
        compiler_params=pltpu.CompilerParams(
            # "arbitrary": the manual cross-step slab prefetch needs sequential steps.
            dimension_semantics=("arbitrary",),
            vmem_limit_bytes=48 * 1024 * 1024,   # v5e scopes only 16 MiB by default
        ),
    )(weight.reshape(-1), bias, x)


def conv2d_ref(x, weight, bias):
    """Pure-JAX reference matching corr2d(x, K) + bias."""
    H, W = x.shape
    KH, KW = weight.shape
    OH, OW = H - KH + 1, W - KW + 1
    out = jnp.zeros((OH, OW), jnp.float32)
    for di in range(KH):
        for dj in range(KW):
            out = out + x[di:di + OH, dj:dj + OW].astype(jnp.float32) * weight[di, dj]
    return (out + bias[0]).astype(x.dtype)


if __name__ == "__main__":
    key = jax.random.PRNGKey(0)
    k_x, k_x2, k_w = jax.random.split(key, 3)

    # Module __init__: weight = torch.rand(kernel_size), bias = torch.zeros(1).
    kernel_size = (3, 3)
    weight = jax.random.uniform(k_w, kernel_size, dtype=jnp.float32)
    bias = jnp.zeros((1,), dtype=jnp.float32)

    # Small 2-D input, consistent with corr2d operating on a single 2-D tensor.
    x = jax.random.normal(k_x, (16, 16), dtype=jnp.float32)
    y = conv2d(x, weight, bias)
    jax.block_until_ready(y)
    assert y.shape == (14, 14)
    assert jnp.allclose(y, conv2d_ref(x, weight, bias), atol=1e-5, rtol=1e-5)

    # Also exercise the multi-block row-tiled path (halo slabs, double-buffered input
    # DMA, partial last block) at a small size by forcing a small row tile.
    x2 = jax.random.normal(k_x2, (40, 24), dtype=jnp.float32)
    y2 = conv2d(x2, weight, bias, tile_rows=16)
    jax.block_until_ready(y2)
    assert y2.shape == (38, 22)
    assert jnp.allclose(y2, conv2d_ref(x2, weight, bias), atol=1e-5, rtol=1e-5)

    print("KERNEL_OK")
</pallas_src>

<mosaic_0001>
module attributes {stable_mosaic.version = 11 : i64} {
  func.func @_conv2d_kernel(%arg0: i32, %arg1: memref<9xf32, #tpu.memory_space<smem>>, %arg2: memref<1xf32, #tpu.memory_space<smem>>, %arg3: memref<16x16xf32, #tpu.memory_space<any>>, %arg4: memref<14x14xf32, #tpu.memory_space<vmem>>, %arg5: memref<2x16x16xf32, #tpu.memory_space<vmem>>, %arg6: memref<2x!tpu.dma_semaphore, #tpu.memory_space<semaphore_mem>>) attributes {dimension_semantics = [#tpu.dimension_semantics<arbitrary>], iteration_bounds = array<i64: 1>, scalar_prefetch = 0 : i64, scratch_operands = 2 : i64, tpu.core_type = #tpu.core_type<tc>, window_params = [{transform_indices = @transform_0, window_bounds = array<i64: 9>}, {transform_indices = @transform_1, window_bounds = array<i64: 1>}, {}, {transform_indices = @transform_3, window_bounds = array<i64: 14, 14>}]} {
    %c0_i32 = arith.constant 0 : i32
    %0 = arith.cmpi eq, %arg0, %c0_i32 : i32
    %1 = arith.extui %0 : i1 to i32
    %c0_i32_0 = arith.constant 0 : i32
    %2 = arith.cmpi ne, %1, %c0_i32_0 : i32
    scf.if %2 {
      %c14_i32_25 = arith.constant 14 : i32
      %83 = arith.muli %arg0, %c14_i32_25 : i32
      %c0_i32_26 = arith.constant 0 : i32
      %84 = arith.minsi %83, %c0_i32_26 : i32
      %c0_i32_27 = arith.constant 0 : i32
      %c0_i32_28 = arith.constant 0 : i32
      %c0_i32_29 = arith.constant 0 : i32
      %85 = tpu.memref_slice %arg3[%84, %c0_i32_29] : memref<16x16xf32, #tpu.memory_space<any>> -> memref<16x16xf32, #tpu.memory_space<any>>
      %c0_i32_30 = arith.constant 0 : i32
      %c0_i32_31 = arith.constant 0 : i32
      %86 = tpu.memref_slice %arg5[%c0_i32_27, %c0_i32_30, %c0_i32_31] : memref<2x16x16xf32, #tpu.memory_space<vmem>> -> memref<1x16x16xf32, #tpu.memory_space<vmem>>
      %87 = tpu.memref_squeeze %86 : memref<1x16x16xf32, #tpu.memory_space<vmem>> -> memref<16x16xf32, #tpu.memory_space<vmem>>
      %88 = tpu.memref_slice %arg6[%c0_i32_28] : memref<2x!tpu.dma_semaphore, #tpu.memory_space<semaphore_mem>> -> memref<1x!tpu.dma_semaphore, #tpu.memory_space<semaphore_mem>>
      %89 = tpu.memref_squeeze %88 : memref<1x!tpu.dma_semaphore, #tpu.memory_space<semaphore_mem>> -> memref<!tpu.dma_semaphore, #tpu.memory_space<semaphore_mem>>
      tpu.enqueue_dma source(%85 : memref<16x16xf32, #tpu.memory_space<any>>) target(%87 : memref<16x16xf32, #tpu.memory_space<vmem>>) target_semaphore(%89 : memref<!tpu.dma_semaphore, #tpu.memory_space<semaphore_mem>>)
    } else {
    }
    %c2_i32 = arith.constant 2 : i32
    %c0_i32_1 = arith.constant 0 : i32
    %3 = arith.cmpi eq, %c2_i32, %c0_i32_1 : i32
    %c1_i32 = arith.constant 1 : i32
    %4 = arith.select %3, %c1_i32, %c2_i32 : i32
    %5 = arith.remsi %arg0, %4 : i32
    %c0_i32_2 = arith.constant 0 : i32
    %6 = arith.cmpi ne, %5, %c0_i32_2 : i32
    %c0_i32_3 = arith.constant 0 : i32
    %7 = arith.cmpi slt, %5, %c0_i32_3 : i32
    %c0_i32_4 = arith.constant 0 : i32
    %8 = arith.cmpi slt, %4, %c0_i32_4 : i32
    %9 = arith.xori %7, %8 : i1
    %10 = arith.andi %9, %6 : i1
    %11 = arith.addi %5, %4 : i32
    %12 = arith.select %10, %11, %5 : i32
    %c0_i32_5 = arith.constant 0 : i32
    %c0_i32_6 = arith.constant 0 : i32
    %13 = tpu.memref_slice %arg3[%c0_i32_5, %c0_i32_6] : memref<16x16xf32, #tpu.memory_space<any>> -> memref<16x16xf32, #tpu.memory_space<any>>
    %c0_i32_7 = arith.constant 0 : i32
    %c0_i32_8 = arith.constant 0 : i32
    %14 = tpu.memref_slice %arg5[%12, %c0_i32_7, %c0_i32_8] : memref<2x16x16xf32, #tpu.memory_space<vmem>> -> memref<1x16x16xf32, #tpu.memory_space<vmem>>
    %15 = tpu.memref_squeeze %14 : memref<1x16x16xf32, #tpu.memory_space<vmem>> -> memref<16x16xf32, #tpu.memory_space<vmem>>
    %16 = tpu.memref_slice %arg6[%12] : memref<2x!tpu.dma_semaphore, #tpu.memory_space<semaphore_mem>> -> memref<1x!tpu.dma_semaphore, #tpu.memory_space<semaphore_mem>>
    %17 = tpu.memref_squeeze %16 : memref<1x!tpu.dma_semaphore, #tpu.memory_space<semaphore_mem>> -> memref<!tpu.dma_semaphore, #tpu.memory_space<semaphore_mem>>
    tpu.wait_dma2 semaphore(%17 : memref<!tpu.dma_semaphore, #tpu.memory_space<semaphore_mem>>) src(%13 : memref<16x16xf32, #tpu.memory_space<any>>) dst(%15 : memref<16x16xf32, #tpu.memory_space<vmem>>)
    %c14_i32 = arith.constant 14 : i32
    %18 = arith.muli %arg0, %c14_i32 : i32
    %c14_i32_9 = arith.constant 14 : i32
    %19 = arith.muli %arg0, %c14_i32_9 : i32
    %c0_i32_10 = arith.constant 0 : i32
    %20 = arith.minsi %19, %c0_i32_10 : i32
    %21 = arith.subi %18, %20 : i32
    %c0_i32_11 = arith.constant 0 : i32
    %22 = arith.addi %21, %c0_i32_11 : i32
    %23 = arith.index_cast %12 : i32 to index
    %24 = arith.index_cast %22 : i32 to index
    %c0 = arith.constant 0 : index
    %25 = vector.load %arg5[%23, %24, %c0] : memref<2x16x16xf32, #tpu.memory_space<vmem>>, vector<1x14x16xf32>
    %26 = vector.shape_cast %25 : vector<1x14x16xf32> to vector<14x16xf32>
    %c0_12 = arith.constant 0 : index
    %27 = memref.load %arg1[%c0_12] : memref<9xf32, #tpu.memory_space<smem>>
    %28 = vector.broadcast %27 : f32 to vector<14x16xf32>
    %29 = arith.mulf %26, %28 : vector<14x16xf32>
    %c0_13 = arith.constant 0 : index
    %30 = memref.load %arg2[%c0_13] : memref<1xf32, #tpu.memory_space<smem>>
    %31 = vector.broadcast %30 : f32 to vector<14x16xf32>
    %32 = arith.addf %29, %31 : vector<14x16xf32>
    %c15_i32 = arith.constant 15 : i32
    %33 = tpu.dynamic_rotate %26 by %c15_i32 dim 1 : vector<14x16xf32>, i32 -> vector<14x16xf32>
    %c1 = arith.constant 1 : index
    %34 = memref.load %arg1[%c1] : memref<9xf32, #tpu.memory_space<smem>>
    %35 = vector.broadcast %34 : f32 to vector<14x16xf32>
    %36 = arith.mulf %33, %35 : vector<14x16xf32>
    %37 = arith.addf %32, %36 : vector<14x16xf32>
    %c14_i32_14 = arith.constant 14 : i32
    %38 = tpu.dynamic_rotate %26 by %c14_i32_14 dim 1 : vector<14x16xf32>, i32 -> vector<14x16xf32>
    %c2 = arith.constant 2 : index
    %39 = memref.load %arg1[%c2] : memref<9xf32, #tpu.memory_space<smem>>
    %40 = vector.broadcast %39 : f32 to vector<14x16xf32>
    %41 = arith.mulf %38, %40 : vector<14x16xf32>
    %42 = arith.addf %37, %41 : vector<14x16xf32>
    %c1_i32_15 = arith.constant 1 : i32
    %43 = arith.addi %21, %c1_i32_15 : i32
    %44 = arith.index_cast %12 : i32 to index
    %45 = arith.index_cast %43 : i32 to index
    %c0_16 = arith.constant 0 : index
    %46 = vector.load %arg5[%44, %45, %c0_16] : memref<2x16x16xf32, #tpu.memory_space<vmem>>, vector<1x14x16xf32>
    %47 = vector.shape_cast %46 : vector<1x14x16xf32> to vector<14x16xf32>
    %c3 = arith.constant 3 : index
    %48 = memref.load %arg1[%c3] : memref<9xf32, #tpu.memory_space<smem>>
    %49 = vector.broadcast %48 : f32 to vector<14x16xf32>
    %50 = arith.mulf %47, %49 : vector<14x16xf32>
    %51 = arith.addf %42, %50 : vector<14x16xf32>
    %c15_i32_17 = arith.constant 15 : i32
    %52 = tpu.dynamic_rotate %47 by %c15_i32_17 dim 1 : vector<14x16xf32>, i32 -> vector<14x16xf32>
    %c4 = arith.constant 4 : index
    %53 = memref.load %arg1[%c4] : memref<9xf32, #tpu.memory_space<smem>>
    %54 = vector.broadcast %53 : f32 to vector<14x16xf32>
    %55 = arith.mulf %52, %54 : vector<14x16xf32>
    %56 = arith.addf %51, %55 : vector<14x16xf32>
    %c14_i32_18 = arith.constant 14 : i32
    %57 = tpu.dynamic_rotate %47 by %c14_i32_18 dim 1 : vector<14x16xf32>, i32 -> vector<14x16xf32>
    %c5 = arith.constant 5 : index
    %58 = memref.load %arg1[%c5] : memref<9xf32, #tpu.memory_space<smem>>
    %59 = vector.broadcast %58 : f32 to vector<14x16xf32>
    %60 = arith.mulf %57, %59 : vector<14x16xf32>
    %61 = arith.addf %56, %60 : vector<14x16xf32>
    %c2_i32_19 = arith.constant 2 : i32
    %62 = arith.addi %21, %c2_i32_19 : i32
    %63 = arith.index_cast %12 : i32 to index
    %64 = arith.index_cast %62 : i32 to index
    %c0_20 = arith.constant 0 : index
    %65 = vector.load %arg5[%63, %64, %c0_20] : memref<2x16x16xf32, #tpu.memory_space<vmem>>, vector<1x14x16xf32>
    %66 = vector.shape_cast %65 : vector<1x14x16xf32> to vector<14x16xf32>
    %c6 = arith.constant 6 : index
    %67 = memref.load %arg1[%c6] : memref<9xf32, #tpu.memory_space<smem>>
    %68 = vector.broadcast %67 : f32 to vector<14x16xf32>
    %69 = arith.mulf %66, %68 : vector<14x16xf32>
    %70 = arith.addf %61, %69 : vector<14x16xf32>
    %c15_i32_21 = arith.constant 15 : i32
    %71 = tpu.dynamic_rotate %66 by %c15_i32_21 dim 1 : vector<14x16xf32>, i32 -> vector<14x16xf32>
    %c7 = arith.constant 7 : index
    %72 = memref.load %arg1[%c7] : memref<9xf32, #tpu.memory_space<smem>>
    %73 = vector.broadcast %72 : f32 to vector<14x16xf32>
    %74 = arith.mulf %71, %73 : vector<14x16xf32>
    %75 = arith.addf %70, %74 : vector<14x16xf32>
    %c14_i32_22 = arith.constant 14 : i32
    %76 = tpu.dynamic_rotate %66 by %c14_i32_22 dim 1 : vector<14x16xf32>, i32 -> vector<14x16xf32>
    %c8 = arith.constant 8 : index
    %77 = memref.load %arg1[%c8] : memref<9xf32, #tpu.memory_space<smem>>
    %78 = vector.broadcast %77 : f32 to vector<14x16xf32>
    %79 = arith.mulf %76, %78 : vector<14x16xf32>
    %80 = arith.addf %75, %79 : vector<14x16xf32>
    %81 = vector.extract_strided_slice %80 {offsets = [0, 0], sizes = [14, 14], strides = [1, 1]} : vector<14x16xf32> to vector<14x14xf32>
    %c0_23 = arith.constant 0 : index
    %c0_24 = arith.constant 0 : index
    %82 = vector.load %arg4[%c0_23, %c0_24] : memref<14x14xf32, #tpu.memory_space<vmem>>, vector<14x14xf32>
    tpu.vector_store %arg4[%c0_23, %c0_24], %81 {strides = array<i32>} : memref<14x14xf32, #tpu.memory_space<vmem>>, vector<14x14xf32>,
    return
  }
  func.func @transform_0(%arg0: i32) -> i32 {
    %c0_i32 = arith.constant 0 : i32
    %c0_i32_0 = arith.constant 0 : i32
    return %c0_i32 : i32
  }
  func.func @transform_1(%arg0: i32) -> i32 {
    %c0_i32 = arith.constant 0 : i32
    %c0_i32_0 = arith.constant 0 : i32
    return %c0_i32 : i32
  }
  func.func @transform_3(%arg0: i32) -> (i32, i32) {
    %c0_i32 = arith.constant 0 : i32
    %c0_i32_0 = arith.constant 0 : i32
    return %arg0, %c0_i32 : i32, i32
  }
}

</mosaic_0001>

<bundles_post_ra>
// kernel: tpu_custom_call.1
= control target key start
LH: loop header
LB: loop body
LE: loop exit
PB: predicated region body
PF: predicated region fallthrough
CT: control target
= control target key end

     0   :  { %9 = vsyncpa [#allocation7], 0  ;;  %s440_s0 = inlined_call_operand.vmem [shape: f32[9], index: 0, kind: input, shape index: {}]   ;;  %s441_s1 = inlined_call_operand.<no memory space> [shape: f32[1], index: 1, kind: input, shape index: {}]   ;;  %s442_s2 = inlined_call_operand.hbm [shape: f32[16,16], index: 2, kind: input, shape index: {}]   ;;  %s443_s3 = inlined_call_operand.hbm [shape: f32[14,14], index: 3, kind: output, shape index: {}]  }
   0x1   :  { %10 = vsyncpa [#allocation6], 0  ;;  %s17_s14 = sshll.u32 %s440_s0, 4  ;;  %s18_s14 = int_to_ptr.vmem [resolvable:$true] %s17_s14 }
   0x2   :  { %s285_s15 = scalar_lea.vmem %s18_s14, 16  ;;  %p290_p1 = scmp.lt.s32.totalorder %s18_s14, %s18_s14 }
   0x3   :  { %p286_p0 = scmp.ne.s32.totalorder %s18_s14, %s285_s15  ;;  %p291_p2 = scmp.lt.s32.totalorder %s285_s15, %s285_s15 }
   0x5   :  { %p292_p3 = por %p291_p2, %p290_p1 }
   0x7   :  { %p293_p4 = pnand %p292_p3, %p286_p0 }
   0x9   :  { %296 = shalt.err (!%p293_p4)
}
   0xa   :  { %s343_s16 = smov [#allocation5]  }
   0xb   :  { %20 = dma.vmem_to_smem %s18_s14, 16, %s343_s16, [#allocation7]  }
   0xc   :  { %337 = dma.done.wait [#allocation7], 16  }
   0xd   :  { %338 = vsyncadd [#allocation7], 4294967280 }
   0xe   :  { %26 = sfence }
   0xf   :  { %s344_s17 = smov [#allocation2]  }
  0x10   :  { %s43_s18 = sshll.u32 %s344_s17, 4  ;;  %s44_s18 = int_to_ptr.vmem [resolvable:$true] %s43_s18 }
  0x11   :  { %s305_s19 = scalar_lea.vmem %s44_s18, 256  ;;  %s309_s20 = scalar_lea.vmem %s44_s18, 512 }
  0x12   :  { %p306_p5 = scmp.ne.s32.totalorder %s44_s18, %s305_s19  ;;  %p310_p6 = scmp.lt.s32.totalorder %s44_s18, %s44_s18 }
  0x13   :  { %p311_p7 = scmp.lt.s32.totalorder %s309_s20, %s305_s19 }
  0x15   :  { %p312_p8 = por %p311_p7, %p310_p6 }
  0x17   :  { %p313_p9 = pnand %p312_p8, %p306_p5 }
  0x19   :  { %316 = shalt.err (!%p313_p9)  }
  0x1a   :  { %46 = dma.hbm_to_vmem [thread:$0]  %s442_s2, 256, %s44_s18, [#allocation3] }
  0x1b   :  { %339 = dma.done.wait [#allocation3], 256 }
  0x1c   :  { %340 = vsyncadd [#allocation3], 4294967040  ;;  %v377_v0 = vld [vmem:[#allocation2] sm:$0xff]  ;;  %s345_s22 = smov 16   ;;  %v383_v2 = vld [vmem:[#allocation2 + $0x8] sm:$0x3f]  ;;  %v73_v50 = vstv %s441_s1 }
  0x1d   :  { %v379_v1 = vld [vmem:[#allocation2 + $0x1] sm:$0xff]  ;;  %77 = vrot.lane.b32.xlu0 %v377_v0, %s345_s22  ;;  %v385_v3 = vld [vmem:[#allocation2 + $0x9] sm:$0x3f]  ;;  %vm76_vm0 = vcmask 1047680   ;;  %s267_s2 = sld [smem:[#allocation5 + $0x1]]  ;;  %s346_s26 = smov 127  }
  0x1e   :  { %128 = vrot.lane.b32.xlu1 %v379_v1, %s345_s22  ;;  %v389_v4 = vld [vmem:[#allocation2 + $0x2] sm:$0xff]  ;;  %v391_v5 = vld [vmem:[#allocation2 + $0xa] sm:$0x3f]  ;;  %s268_s23 = sld [smem:[#allocation5 + $0x2]]  ;;  %s347_s28 = smov 126   ;;  %vm219_vm1 = vcmask 113664  }
  0x1f   :  { %s270_s24 = sld [smem:[#allocation5 + $0x4]]  ;;  %s348_s1 = smov [#allocation8]   ;;  %vm221_vm2 = vcmask 111616  }
  0x20   :  { %s409_s25 = sld [smem:[#allocation5 + $0x5]]  ;;  %s228_s8 = sshll.u32 %s348_s1, 4  ;;  %s229_s8 = int_to_ptr.vmem [resolvable:$true] %s228_s8 }
  0x21   :  { %80 = vrot.lane.b32.xlu0 %v383_v2, %s345_s22  ;;  %s273_s27 = sld [smem:[#allocation5 + $0x7]]  ;;  %s317_s9 = scalar_lea.vmem %s229_s8, 256 }
  0x22   :  { %131 = vrot.lane.b32.xlu1 %v385_v3, %s345_s22  ;;  %s274_s29 = sld [smem:[#allocation5 + $0x8]]  ;;  %p318_p10 = scmp.ne.s32.totalorder %s229_s8, %s317_s9 }
  0x23   :  { %v90_v18 = vstv %s267_s2  ;;  %s68_s30 = sld [smem:[#allocation5]]  ;;  %p322_p11 = scmp.lt.s32.totalorder %s229_s8, %s229_s8 }
  0x24   :  { %v104_v22 = vstv %s268_s23  ;;  %s269_s4 = sld [smem:[#allocation5 + $0x3]]  ;;  %p323_p12 = scmp.lt.s32.totalorder %s317_s9, %s317_s9 }
  0x25   :  { %179 = vrot.lane.b32.xlu0 %v389_v4, %s345_s22  ;;  %v141_v26 = vstv %s270_s24  ;;  %s272_s7 = sld [smem:[#allocation5 + $0x6]] }
  0x26   :  { %182 = vrot.lane.b32.xlu1 %v391_v5, %s345_s22  ;;  %v155_v35 = vstv %s409_s25  ;;  %p324_p13 = por %p323_p12, %p322_p11 }
  0x27   :  { %v192_v37 = vstv %s273_s27 }
  0x28   :  { %v206_v42 = vstv %s274_s29  ;;  %p325_p0 = pnand %p324_p13, %p318_p10 }
  0x29   :  { %v69_v48 = vstv %s68_s30 }
  0x2a   :  { %v70_v49 = vmul.f32 %v69_v48, %v377_v0  ;;  %v71_v52 = vmul.f32 %v69_v48, %v383_v2  ;;  %v123_v54 = vstv %s269_s4 }
  0x2b   :  { %v124_v57 = vmul.f32 %v123_v54, %v379_v1  ;;  %v125_v63 = vmul.f32 %v123_v54, %v385_v3 }
  0x2c   :  { %v74_v51 = vadd.f32 %v73_v50, %v70_v49  ;;  %v75_v56 = vadd.f32 %v73_v50, %v71_v52 }
  0x8f   :  { %v78_v6 = vpop.permute.xlu0 %77 }
  0x90   :  { %v129_v7 = vpop.permute.xlu1 %128  ;;  %v79_v8 = vsel %vm76_vm0, %v78_v6, %v377_v0 }
  0x91   :  { %83 = vrot.lane.b32.xlu0 %v79_v8, %s345_s22  ;;  %v130_v9 = vsel %vm76_vm0, %v129_v7, %v379_v1  ;;  %v174_v7 = vstv %s272_s7 }
  0x93   :  { %v81_v10 = vpop.permute.xlu0 %80 }
  0x94   :  { %v132_v11 = vpop.permute.xlu1 %131  ;;  %v82_v12 = vsel %vm76_vm0, %v81_v10, %v383_v2  ;;  %v175_v10 = vmul.f32 %v174_v7, %v389_v4 }
  0x95   :  { %85 = vrot.lane.b32.xlu1 %v82_v12, %s345_s22  ;;  %134 = vrot.lane.b32.xlu0 %v130_v9, %s345_s22  ;;  %v133_v13 = vsel %vm76_vm0, %v132_v11, %v385_v3 }
  0x97   :  { %v180_v14 = vpop.permute.xlu0 %179 }
  0x98   :  { %v183_v15 = vpop.permute.xlu1 %182  ;;  %v181_v16 = vsel %vm76_vm0, %v180_v14, %v389_v4 }
  0x99   :  { %136 = vrot.lane.b32.xlu1 %v133_v13, %s345_s22  ;;  %185 = vrot.lane.b32.xlu0 %v181_v16, %s345_s22  ;;  %v184_v17 = vsel %vm76_vm0, %v183_v15, %v391_v5  ;;  %v176_v15 = vmul.f32 %v174_v7, %v391_v5 }
  0x9d   :  { %187 = vrot.lane.b32.xlu1 %v184_v17, %s345_s22 }
 0x103   :  { %v84_v19 = vpop.permute.xlu0 %83 }
 0x104   :  { %v87_v20 = vsel %vm76_vm0, %v84_v19, %v377_v0 }
 0x105   :  { %v91_v21 = vmul.f32 %v90_v18, %v87_v20  ;;  %v105_v28 = vmul.f32 %v104_v22, %v87_v20 }
 0x107   :  { %v86_v23 = vpop.permute.xlu1 %85  ;;  %95 = vrot.lane.b32.xlu0 %v91_v21, %s346_s26  ;;  %v135_v24 = vpop.permute.xlu0 %134 }
 0x108   :  { %v88_v25 = vsel %vm76_vm0, %v86_v23, %v383_v2  ;;  %v138_v27 = vsel %vm76_vm0, %v135_v24, %v379_v1 }
 0x109   :  { %v92_v29 = vmul.f32 %v90_v18, %v88_v25  ;;  %v142_v30 = vmul.f32 %v141_v26, %v138_v27  ;;  %v106_v33 = vmul.f32 %v104_v22, %v88_v25  ;;  %v156_v39 = vmul.f32 %v155_v35, %v138_v27 }
 0x10b   :  { %97 = vrot.lane.b32.xlu1 %v92_v29, %s346_s26  ;;  %109 = vrot.lane.b32.xlu0 %v105_v28, %s347_s28  ;;  %v137_v31 = vpop.permute.xlu1 %136  ;;  %v186_v34 = vpop.permute.xlu0 %185 }
 0x10c   :  { %v139_v32 = vsel %vm76_vm0, %v137_v31, %v385_v3  ;;  %v189_v38 = vsel %vm76_vm0, %v186_v34, %v389_v4 }
 0x10d   :  { %v143_v36 = vmul.f32 %v141_v26, %v139_v32  ;;  %v193_v41 = vmul.f32 %v192_v37, %v189_v38  ;;  %v157_v44 = vmul.f32 %v155_v35, %v139_v32  ;;  %v207_v45 = vmul.f32 %v206_v42, %v189_v38 }
 0x10f   :  { %111 = vrot.lane.b32.xlu1 %v106_v33, %s347_s28  ;;  %146 = vrot.lane.b32.xlu0 %v142_v30, %s346_s26  ;;  %v188_v40 = vpop.permute.xlu1 %187 }
 0x110   :  { %v190_v43 = vsel %vm76_vm0, %v188_v40, %v391_v5 }
 0x111   :  { %v194_v46 = vmul.f32 %v192_v37, %v190_v43  ;;  %v208_v47 = vmul.f32 %v206_v42, %v190_v43 }
 0x113   :  { %148 = vrot.lane.b32.xlu1 %v143_v36, %s346_s26  ;;  %160 = vrot.lane.b32.xlu0 %v156_v39, %s347_s28 }
 0x117   :  { %162 = vrot.lane.b32.xlu1 %v157_v44, %s347_s28  ;;  %197 = vrot.lane.b32.xlu0 %v193_v41, %s346_s26 }
 0x11b   :  { %199 = vrot.lane.b32.xlu1 %v194_v46, %s346_s26  ;;  %211 = vrot.lane.b32.xlu0 %v207_v45, %s347_s28 }
 0x11f   :  { %213 = vrot.lane.b32.xlu1 %v208_v47, %s347_s28 }
 0x179   :  { %v96_v53 = vpop.permute.xlu0 %95 }
 0x17a   :  { %v101_v55 = vadd.f32 %v96_v53, %v74_v51 }
 0x17d   :  { %v98_v58 = vpop.permute.xlu1 %97  ;;  %v110_v59 = vpop.permute.xlu0 %109 }
 0x17e   :  { %v115_v60 = vadd.f32 %v110_v59, %v101_v55  ;;  %v102_v61 = vadd.f32 %v98_v58, %v75_v56 }
 0x180   :  { %v126_v62 = vadd.f32 %v124_v57, %v115_v60 }
 0x181   :  { %v112_v0 = vpop.permute.xlu1 %111  ;;  %v147_v6 = vpop.permute.xlu0 %146 }
 0x182   :  { %v116_v8 = vadd.f32 %v112_v0, %v102_v61  ;;  %v152_v9 = vadd.f32 %v147_v6, %v126_v62 }
 0x184   :  { %v127_v2 = vadd.f32 %v125_v63, %v116_v8 }
 0x185   :  { %v149_v11 = vpop.permute.xlu1 %148  ;;  %v161_v12 = vpop.permute.xlu0 %160 }
 0x186   :  { %v166_v13 = vadd.f32 %v161_v12, %v152_v9  ;;  %v153_v14 = vadd.f32 %v149_v11, %v127_v2 }
 0x188   :  { %v177_v1 = vadd.f32 %v175_v10, %v166_v13 }
 0x189   :  { %v163_v16 = vpop.permute.xlu1 %162  ;;  %v198_v17 = vpop.permute.xlu0 %197 }
 0x18a   :  { %v167_v18 = vadd.f32 %v163_v16, %v153_v14  ;;  %v203_v19 = vadd.f32 %v198_v17, %v177_v1 }
 0x18c   :  { %v178_v3 = vadd.f32 %v176_v15, %v167_v18 }
 0x18d   :  { %v200_v20 = vpop.permute.xlu1 %199  ;;  %v212_v21 = vpop.permute.xlu0 %211 }
 0x18e   :  { %v217_v22 = vadd.f32 %v212_v21, %v203_v19  ;;  %v204_v23 = vadd.f32 %v200_v20, %v178_v3 }
 0x190   :  { %220 = vst.msk [vmem:[#allocation8] sm:$0xff] %vm219_vm1, %v217_v22 }
 0x191   :  { %v214_v4 = vpop.permute.xlu1 %213 }
 0x192   :  { %v218_v24 = vadd.f32 %v214_v4, %v204_v23 }
 0x194   :  { %222 = vst.msk [vmem:[#allocation8 + $0x8] sm:$0x3f] %vm221_vm2, %v218_v24 }
 0x195   :  { %328 = shalt.err (!%p325_p0)
}
 0x196   :  { %s349_s10 = smov 128   ;;  %s350_s11 = smov 8  }
 0x197   :  { %234 = dma.vmem_to_hbm [thread:$0]  %s229_s8, 256, %s443_s3, [#allocation6], %s349_s10, %s349_s10, %s350_s11  }
 0x198   :  { %341 = dma.done.wait [#allocation6], 256  }
 0x199   :  { %342 = vsyncadd [#allocation6], 4294967040 }
 0x19a   :  { %238 = vsyncpa [#allocation6], 1 }
 0x19b   :  { %239 = vsyncpa [#allocation7], 1 }
 0x19c   :  { %240 = vsyncmov [#allocation3] }
 0x19f   :  { %s241_s14 = vpop.sfrf %240 }
 0x1a0   :  { %p275_p1 = scmp.ne.s32.totalorder %s241_s14, 0 }
 0x1a2   :  { %245 = shalt.err (%p275_p1)  }
 0x1a3   :  { %247 = vsyncmov [#allocation3 + $0x1] }
 0x1a6   :  { %s248_s15 = vpop.sfrf %247 }
 0x1a7   :  { %p276_p2 = scmp.ne.s32.totalorder %s248_s15, 0 }
 0x1a9   :  { %252 = shalt.err (%p276_p2)  }

</bundles_post_ra>
